<compile_context>
chip_gen: v7x
topology: tpu7x:2x2x1
jax: 0.10.0
libtpu: 0.0.40
codegen_flags: <defaults>
</compile_context>

<pallas_src>
import numpy as np
import jax
import jax.numpy as jnp
from jax import lax
from jax.experimental import pallas as pl
from jax.experimental.pallas import tpu as pltpu


# ------------------------------------------------------------- VMEM sizing ----
def _vmem_capacity_bytes():
    """Generation-aware physical VMEM (v5e/v6e: 128 MiB, v7x: 64 MiB per TC)."""
    try:
        cap = int(pltpu.get_tpu_info().vmem_capacity_bytes)
        if cap > 0:
            return cap
    except Exception:
        pass
    return 64 << 20            # conservative default (v7x-sized)


def _vmem_limit(needed_bytes, cap):
    hi = int(cap * 3 // 4)     # ~48 MiB on v7x, ~96 MiB on v5e/v6e
    return int(min(max(4 * needed_bytes, 32 << 20), hi))


# ----------------------------------------------------------------- kernels ----
def _fullchain_kernel(x_ref, w_ref, out_ref):
    """Whole block chain as a single matmul against the host-folded weight
       W = [P | Q | P/NB | Q/NB] (or [P | Q] when means are wrapper-side).
       x_ref (B, L) f32; w_ref (L, C) bf16; out_ref (B, C) f32."""
    out_ref[...] = jnp.dot(x_ref[...].astype(jnp.bfloat16), w_ref[...],
                           preferred_element_type=jnp.float32)


def _blocks_resident_kernel(x_ref, c2_ref, out_ref):
    """Per-block recurrence, all folded weights VMEM-resident.
       carry = [fc | bc] (B, 2L) f32; per block: carry += carry @ C2[k] where
       C2[k] = [[0], [A0 @ [Af | -Ab]]] (2L, 2L) bf16 (sign folded on the host,
       so the loop body is one matmul + one full-width add, no lane slices)."""
    L = x_ref.shape[1]
    nb = c2_ref.shape[0]
    x0 = x_ref[...]
    carry0 = jnp.concatenate([jnp.zeros_like(x0), x0], axis=1)

    def body(k, carry):
        return carry + jnp.dot(carry.astype(jnp.bfloat16), c2_ref[k],
                               preferred_element_type=jnp.float32)

    carry = lax.fori_loop(0, nb, body, carry0, unroll=(nb <= 32))
    fc = carry[:, :L]
    bc = carry[:, L:]
    if out_ref.shape[1] == 4 * L:          # lane-dense pack incl. /NB means (L<64)
        inv = jnp.float32(1.0 / nb)
        out_ref[...] = jnp.concatenate([bc, fc, bc * inv, fc * inv], axis=1)
    else:                                  # L >= 64: means computed in the wrapper
        out_ref[...] = jnp.concatenate([bc, fc], axis=1)


def _blocks_stream_kernel(x_ref, c2_ref, out_ref, carry_ref):
    """Streaming fallback: one grid step == one block; the single folded (2L,2L)
       weight is DMA'd per step and the carry lives in VMEM scratch.
       NOTE: out_ref's block index is constant across the grid and is written
       only on the last step — do not change out_specs to vary per step."""
    blk = pl.program_id(0)
    nb = pl.num_programs(0)
    L = x_ref.shape[1]

    @pl.when(blk == 0)
    def _init():
        x0 = x_ref[...]
        carry_ref[...] = jnp.concatenate([jnp.zeros_like(x0), x0], axis=1)

    carry_ref[...] = carry_ref[...] + jnp.dot(
        carry_ref[...].astype(jnp.bfloat16), c2_ref[...],
        preferred_element_type=jnp.float32)

    @pl.when(blk == nb - 1)
    def _fin():
        fc = carry_ref[:, :L]
        bc = carry_ref[:, L:]
        if out_ref.shape[1] == 4 * L:
            inv = jnp.float32(1.0) / jnp.float32(nb)
            out_ref[...] = jnp.concatenate([bc, fc, bc * inv, fc * inv], axis=1)
        else:
            out_ref[...] = jnp.concatenate([bc, fc], axis=1)


# ---------------------------------------------------------------- wrappers ----
def _unpack(packed, B, L, nb):
    back = packed[:, 0 * L:1 * L]
    fore = packed[:, 1 * L:2 * L]
    if packed.shape[1] == 4 * L:
        bmean = packed[:, 2 * L:3 * L]
        fmean = packed[:, 3 * L:4 * L]
    else:
        inv = jnp.float32(1.0 / nb)
        bmean = back * inv
        fmean = fore * inv
    return back.reshape(B, L, 1), fore.reshape(B, L, 1), bmean, fmean


def parallel_nbeats_forward_fullfold(x, W, nb):
    """Fast path: whole linear block chain folded on the host into W (L, C).
       x: (B, L, 1) f32.  Returns (backcast, forecast, backcast_mean, forecast_mean)."""
    B, L, E = x.shape
    assert E == 1 and W.shape[0] == L
    x2 = x.reshape(B, L).astype(jnp.float32)
    C = W.shape[1]
    cap = _vmem_capacity_bytes()
    needed = W.size * W.dtype.itemsize + (B * L + B * C) * 4
    packed = pl.pallas_call(
        _fullchain_kernel,
        out_shape=jax.ShapeDtypeStruct((B, C), jnp.float32),
        in_specs=[pl.BlockSpec(memory_space=pltpu.MemorySpace.VMEM),
                  pl.BlockSpec(memory_space=pltpu.MemorySpace.VMEM)],
        out_specs=pl.BlockSpec(memory_space=pltpu.MemorySpace.VMEM),
        compiler_params=pltpu.CompilerParams(
            vmem_limit_bytes=_vmem_limit(needed, cap)),
    )(x2, W)
    return _unpack(packed, B, L, nb)


def parallel_nbeats_forward_blocks(x, C2, *, vmem_budget_bytes=None):
    """Per-block path: C2 (NB, 2L, 2L) bf16 folded block-update matrices.
       Resident single-invocation kernel when the weights fit the generation-aware
       VMEM budget, else a per-block streaming grid."""
    B, L, E = x.shape
    assert E == 1
    NB, twoL, _ = C2.shape
    assert twoL == 2 * L
    x2 = x.reshape(B, L).astype(jnp.float32)

    out_cols = 4 * L if (2 * L) % 128 != 0 else 2 * L
    out_shape = jax.ShapeDtypeStruct((B, out_cols), jnp.float32)

    cap = _vmem_capacity_bytes()
    if vmem_budget_bytes is None:
        vmem_budget_bytes = int(cap * 3 // 4)
    weight_bytes = C2.size * C2.dtype.itemsize
    io_bytes = (B * L + B * out_cols) * 4
    resident = weight_bytes + 8 * io_bytes <= vmem_budget_bytes
    vmem_limit = _vmem_limit(weight_bytes + io_bytes, cap)

    if resident:
        packed = pl.pallas_call(
            _blocks_resident_kernel,
            out_shape=out_shape,
            in_specs=[pl.BlockSpec(memory_space=pltpu.MemorySpace.VMEM),
                      pl.BlockSpec(memory_space=pltpu.MemorySpace.VMEM)],
            out_specs=pl.BlockSpec(memory_space=pltpu.MemorySpace.VMEM),
            compiler_params=pltpu.CompilerParams(vmem_limit_bytes=vmem_limit),
        )(x2, C2)
    else:
        # Per-block streaming grid ("arbitrary": the chain is a serial recurrence).
        # TODO(synk): consider pipeline_mode=pl.Buffered(3) on the weight spec to
        # hide the tiny per-block DMA latency more aggressively.
        grid_spec = pltpu.PrefetchScalarGridSpec(
            num_scalar_prefetch=0,
            grid=(NB,),
            in_specs=[
                pl.BlockSpec((B, L), lambda i: (0, 0)),                  # x (const)
                pl.BlockSpec((None, 2 * L, 2 * L), lambda i: (i, 0, 0)),  # C2[i]
            ],
            out_specs=pl.BlockSpec((B, out_cols), lambda i: (0, 0)),
            scratch_shapes=[pltpu.VMEM((B, 2 * L), jnp.float32)],
        )
        packed = pl.pallas_call(
            _blocks_stream_kernel,
            out_shape=out_shape,
            grid_spec=grid_spec,
            compiler_params=pltpu.CompilerParams(
                dimension_semantics=("arbitrary",),
                vmem_limit_bytes=vmem_limit),
        )(x2, C2)

    return _unpack(packed, B, L, NB)


# ------------------------------------------------------ host parameter glue ----
def build_parallel_nbeats_params(seed, L, backcast_length, inner_size, stacks,
                                 blocks_per_stack, duplicate=1, modes1=1064,
                                 weight_dtype=jnp.bfloat16):
    """Deterministically build the folded weights (all algebra in float64):
         W  : (L, 4L) or (L, 2L)  full-chain fold [P | Q | P/NB | Q/NB]
         C2 : (NB, 2L, 2L)        per-block packed-carry update matrices."""
    assert 1000 < modes1 <= 10000          # branch hard-coded by Parallel_Block
    rng = np.random.RandomState(seed)
    key = jax.random.PRNGKey(seed)
    heads = duplicate
    nb = stacks * blocks_per_stack

    def spectral_layer(sub_key, seq_len, in_ch, out_ch):
        # index selection: 'modes1 > 1000' branch of SpectralConv1d.__init__
        modes2 = modes1 - 1000
        index = list(range(0, seq_len // 2))
        rng.shuffle(index)
        index = index[:modes2]
        M = len(index)
        scale = 1.0 / (in_ch * out_ch)
        kr, ki = jax.random.split(sub_key)
        w_re = scale * np.asarray(jax.random.uniform(kr, (1, 256, 1, M)), np.float64)
        w_im = scale * np.asarray(jax.random.uniform(ki, (1, 256, 1, M)), np.float64)
        S = w_re[0, :, 0, :].sum(0) + 1j * w_im[0, :, 0, :].sum(0)     # (M,) complex
        idx = np.asarray(index)
        ll = np.arange(L)
        ang_f = 2.0 * np.pi * np.outer(ll, idx) / L
        Fc, Fs = np.cos(ang_f), -np.sin(ang_f)                          # (L, M)
        mm = np.arange(M)
        wm = np.where((mm == 0) | ((L % 2 == 0) & (mm == L // 2)), 1.0, 2.0)
        ang_i = 2.0 * np.pi * np.outer(mm, ll) / L
        Ic = (wm[:, None] / L) * np.cos(ang_i)                          # (M, L)
        Is = -(wm[:, None] / L) * np.sin(ang_i)
        sr, si = S.real, S.imag
        # Fold rfft -> per-mode complex scale -> irfft into one real (L, L) matrix
        # (exact, done in float64 on the host): spectral(v) == v @ A.
        A = (Fc @ (sr[:, None] * Ic) - Fs @ (si[:, None] * Ic)
             + Fc @ (si[:, None] * Is) + Fs @ (sr[:, None] * Is))
        return dict(index=idx, S=S, A=A)

    c2_list, ref_blocks = [], []
    P = np.eye(L)                      # full-chain backcast operator (running)
    Q = np.zeros((L, L))               # full-chain forecast operator (running)
    for b in range(nb):
        kb = jax.random.fold_in(key, b)
        basic = spectral_layer(jax.random.fold_in(kb, 0),
                               seq_len=inner_size * heads,
                               in_ch=backcast_length * heads,
                               out_ch=inner_size * heads)
        theta_f = spectral_layer(jax.random.fold_in(kb, 1),
                                 seq_len=backcast_length * heads,
                                 in_ch=inner_size * heads,
                                 out_ch=backcast_length * heads)
        theta_b = spectral_layer(jax.random.fold_in(kb, 2),
                                 seq_len=backcast_length * heads,
                                 in_ch=inner_size * heads,
                                 out_ch=backcast_length * heads)
        A0, Af, Ab = basic['A'], theta_f['A'], theta_b['A']

        # Per-block fold: single update matrix on the packed carry [fc | bc],
        # with the backcast minus sign folded into the weight.
        Cfb = A0 @ np.concatenate([Af, -Ab], axis=1)      # (L, 2L) = [f | -b]
        C2 = np.zeros((2 * L, 2 * L))
        C2[L:, :] = Cfb                                    # only bc rows contribute
        c2_list.append(C2)

        # Full-chain fold:  fc += bc @ (A0@Af);  bc = bc @ (I - A0@Ab)
        F = A0 @ Af
        M = np.eye(L) - A0 @ Ab
        Q = Q + P @ F
        P = P @ M

        ref_blocks.append(dict(basic=basic, theta_f=theta_f, theta_b=theta_b))

    if (2 * L) % 128 != 0:                                 # L < 64: pack means too
        Wnp = np.concatenate([P, Q, P / nb, Q / nb], axis=1)   # (L, 4L)
    else:                                                  # L >= 64: means in wrapper
        Wnp = np.concatenate([P, Q], axis=1)                   # (L, 2L)

    W = jnp.asarray(Wnp, weight_dtype)
    C2 = jnp.asarray(np.stack(c2_list), weight_dtype)      # (NB, 2L, 2L)
    return (W, C2), ref_blocks


# ------------------------- float64 numpy reference (literal transcription) ----
def _spectral_ref(x, layer):
    B, L, E = x.shape
    q = x[:, :, None, :]                                 # unsqueeze(-2): (B, L, 1, E)
    xp = np.transpose(q, (0, 2, 3, 1))                   # permute -> (B, H, E, L)
    x_ft = np.fft.rfft(xp, axis=-1)
    out_ft = np.zeros((B, 1, E, L // 2 + 1), dtype=np.complex128)
    for wi, i in enumerate(layer['index']):
        # einsum('bhi,hio->bho') with E == 1 broadcast-contracts the input against
        # the 256 weight rows -> x_ft * sum(weights1[..., wi]).
        out_ft[:, :, :, wi] = x_ft[:, :, :, i] * layer['S'][wi]
    y = np.fft.irfft(out_ft, n=L, axis=-1)               # (B, 1, E, L)
    return np.transpose(y[:, 0], (0, 2, 1))              # squeeze(1).permute(0,2,1)


def _reference_forward(x, ref_blocks, stacks, blocks_per_stack):
    bc = x.astype(np.float64)
    fc = None
    for blk in ref_blocks:
        x1 = _spectral_ref(bc, blk['basic'])
        f = _spectral_ref(x1, blk['theta_f'])
        b = _spectral_ref(x1, blk['theta_b'])
        bc = bc - b
        fc = f if fc is None else fc + f
    B = x.shape[0]
    K = stacks * blocks_per_stack
    bm = bc.reshape(B, -1, 1).mean(axis=2)               # duplicate == 1
    fm = fc.reshape(B, -1, 1).mean(axis=2)
    return bc, fc, bm / K, fm / K


if __name__ == "__main__":
    # Small config consistent with the module (inner_size shrunk so that the
    # randomly selected Fourier indices fit inside rfft(L) for L = backcast_length).
    B = 2
    backcast_length = 32          # sequence length L of the input backcast
    inner_size = 32
    stacks = 2
    blocks_per_stack = 2
    duplicate = 1
    NB = stacks * blocks_per_stack

    (W, C2), ref_blocks = build_parallel_nbeats_params(
        seed=0, L=backcast_length, backcast_length=backcast_length,
        inner_size=inner_size, stacks=stacks,
        blocks_per_stack=blocks_per_stack, duplicate=duplicate)

    key = jax.random.PRNGKey(0)
    x = jax.random.normal(key, (B, backcast_length, 1), dtype=jnp.float32)

    rb, rf, rbm, rfm = _reference_forward(np.asarray(x, np.float64), ref_blocks,
                                          stacks, blocks_per_stack)
    want = (rb, rf, rbm, rfm)

    # 1) Fast path: full linear chain folded on the host -> single matmul kernel.
    outs = parallel_nbeats_forward_fullfold(x, W, NB)
    jax.block_until_ready(outs)
    for got, w in zip(outs, want):
        np.testing.assert_allclose(np.asarray(got).reshape(w.shape), w,
                                   rtol=2e-2, atol=2e-2)

    # 2) Per-block resident path (folded per-block update matrices, unrolled loop).
    outs_b = parallel_nbeats_forward_blocks(x, C2)
    jax.block_until_ready(outs_b)
    for got, w in zip(outs_b, want):
        np.testing.assert_allclose(np.asarray(got).reshape(w.shape), w,
                                   rtol=2e-2, atol=2e-2)

    # 3) Streaming fallback (the path a VMEM-constrained config would take).
    outs_s = parallel_nbeats_forward_blocks(x, C2, vmem_budget_bytes=0)
    jax.block_until_ready(outs_s)
    for got, w in zip(outs_s, want):
        np.testing.assert_allclose(np.asarray(got).reshape(w.shape), w,
                                   rtol=2e-2, atol=2e-2)

    print("KERNEL_OK")
</pallas_src>

<mosaic_0001>
module attributes {stable_mosaic.version = 11 : i64} {
  func.func @_fullchain_kernel(%arg0: memref<2x32xf32, #tpu.memory_space<vmem>>, %arg1: memref<32x128xbf16, #tpu.memory_space<vmem>>, %arg2: memref<2x128xf32, #tpu.memory_space<vmem>>) attributes {dimension_semantics = [], scalar_prefetch = 0 : i64, scratch_operands = 0 : i64, tpu.core_type = #tpu.core_type<tc>} {
    %c0 = arith.constant 0 : index
    %c0_0 = arith.constant 0 : index
    %0 = vector.load %arg0[%c0, %c0_0] : memref<2x32xf32, #tpu.memory_space<vmem>>, vector<2x32xf32>
    %1 = arith.truncf %0 : vector<2x32xf32> to vector<2x32xbf16>
    %c0_1 = arith.constant 0 : index
    %c0_2 = arith.constant 0 : index
    %2 = vector.load %arg1[%c0_1, %c0_2] : memref<32x128xbf16, #tpu.memory_space<vmem>>, vector<32x128xbf16>
    %cst = arith.constant dense<0.000000e+00> : vector<2x128xf32>
    %3 = tpu.matmul %1, %2, %cst {dimension_numbers = #tpu.dot_dimension_numbers<[1], [0], [0], [1], [0, 0, 1, 1], [], []>} : vector<2x32xbf16>, vector<32x128xbf16>, vector<2x128xf32> -> vector<2x128xf32>
    %c0_3 = arith.constant 0 : index
    %c0_4 = arith.constant 0 : index
    %4 = vector.load %arg2[%c0_3, %c0_4] : memref<2x128xf32, #tpu.memory_space<vmem>>, vector<2x128xf32>
    tpu.vector_store %arg2[%c0_3, %c0_4], %3 {strides = array<i32>} : memref<2x128xf32, #tpu.memory_space<vmem>>, vector<2x128xf32>,
    return
  }
}

</mosaic_0001>

<bundles_post_ra>
// kernel: tpu_custom_call.1
= control target key start
LH: loop header
LB: loop body
LE: loop exit
PB: predicated region body
PF: predicated region fallthrough
CT: control target
= control target key end

     0   :  { %7 = vsyncpa [#allocation3], 0  ;;  %s278_s0 = inlined_call_operand.hbm [shape: f32[2,32], index: 0, kind: input, shape index: {}]   ;;  %s279_s1 = inlined_call_operand.hbm [shape: bf16[32,128], index: 1, kind: input, shape index: {}]   ;;  %s280_s2 = inlined_call_operand.hbm [shape: f32[2,128], index: 2, kind: output, shape index: {}]  }
   0x1   :  { %8 = vsyncpa [#allocation6], 0 }
   0x2   :  { %9 = vsyncpa [#allocation4], 0  ;;  %s213_s9 = smov [#allocation2]   ;;  %s214_s11 = smov [#allocation5]  }
   0x3   :  { %s16_s10 = sshll.u32 %s213_s9, 4  ;;  %s25_s12 = sshll.u32 %s214_s11, 4  ;;  %s17_s10 = int_to_ptr.vmem [resolvable:$true] %s16_s10  ;;  %s235_s12 = int_to_ptr.vmem [resolvable:$true] %s25_s12 }
   0x4   :  { %s141_s15 = scalar_lea.hbm %s278_s0, 32 }
   0x5   :  { %p142_p0 = scmp.ne.s32.totalorder %s278_s0, %s141_s15  ;;  %p145_p1 = scmp.lt.u32.totalorder %s141_s15, %s278_s0 }
   0x7   :  { %p147_p2 = pnand %p145_p1, %p142_p0 }
   0x9   :  { %150 = shalt.err (!%p147_p2)
}
   0xa   :  { %s151_s20 = scalar_lea.vmem %s17_s10, 32  ;;  %p156_p4 = scmp.lt.s32.totalorder %s17_s10, %s17_s10 }
   0xb   :  { %p152_p3 = scmp.ne.s32.totalorder %s17_s10, %s151_s20  ;;  %p157_p5 = scmp.lt.s32.totalorder %s151_s20, %s151_s20 }
   0xd   :  { %p158_p6 = por %p157_p5, %p156_p4 }
   0xf   :  { %p159_p7 = pnand %p158_p6, %p152_p3 }
  0x11   :  { %162 = shalt.err (!%p159_p7)
}
  0x12   :  { %19 = dma.hbm_to_vmem [thread:$0]  %s278_s0, 32, %s17_s10, [#allocation3]  }
  0x13   :  { %s163_s25 = scalar_lea.hbm %s279_s1, 256 }
  0x14   :  { %p164_p8 = scmp.ne.s32.totalorder %s279_s1, %s163_s25  ;;  %p167_p9 = scmp.lt.u32.totalorder %s163_s25, %s279_s1 }
  0x16   :  { %p169_p10 = pnand %p167_p9, %p164_p8 }
  0x18   :  { %172 = shalt.err (!%p169_p10)
}
  0x19   :  { %s173_s30 = scalar_lea.vmem %s235_s12, 256  ;;  %p178_p12 = scmp.lt.s32.totalorder %s235_s12, %s235_s12 }
  0x1a   :  { %p174_p11 = scmp.ne.s32.totalorder %s235_s12, %s173_s30  ;;  %p179_p13 = scmp.lt.s32.totalorder %s173_s30, %s173_s30 }
  0x1c   :  { %p180_p0 = por %p179_p13, %p178_p12 }
  0x1e   :  { %p181_p1 = pnand %p180_p0, %p174_p11 }
  0x20   :  { %184 = shalt.err (!%p181_p1)
}
  0x21   :  { %s215_s0 = smov 64   ;;  %s216_s3 = smov 4  }
  0x22   :  { %31 = dma.hbm_to_vmem [thread:$0]  %s279_s1, 256, %s235_s12, [#allocation6], %s215_s0, %s215_s0, %s216_s3  }
  0x23   :  { %207 = dma.done.wait [#allocation3], 32  }
  0x24   :  { %208 = vsyncadd [#allocation3], 4294967264 }
  0x25   :  { %209 = dma.done.wait [#allocation6], 256  }
  0x26   :  { %210 = vsyncadd [#allocation6], 4294967040  ;;  %v217_v0 = vmov 0.0   ;;  %vm218_vm0 = vmmov 0   ;;  %v139_v1 = vld [vmem:[#allocation5] sm:$0xff]   ;;  %v140_v2 = vld [vmem:[#allocation5 + $0x8] sm:$0xff]  }
  0x27   :  { %124 = vmatprep.subr.bf16.mxu0 %v217_v0  ;;  %128 = vmatprep.mubr.msk.bf16.mxu0 %vm218_vm0, %v217_v0  ;;  %v39_v3 = vld [vmem:[#allocation2] sm:$0x3]  ;;  %vm57_vm1 = vcmask 261120   ;;  %s219_s6 = smov [#allocation7]  }
  0x28   :  { %125 = vmatpush3.bf16.msra.mxu0 %v139_v1  ;;  %v40_v4 = vpack.c.bf16 %v39_v3, %v39_v3  ;;  %s108_s7 = sshll.u32 %s219_s6, 4  ;;  %s109_s7 = int_to_ptr.vmem [resolvable:$true] %s108_s7 }
  0x29   :  { %126 = vmatprep.subr.bf16.mxu0 %v217_v0  ;;  %s185_s1 = scalar_lea.vmem %s109_s7, 32  ;;  %p190_p3 = scmp.lt.s32.totalorder %s109_s7, %s109_s7 }
  0x2a   :  { %p186_p2 = scmp.ne.s32.totalorder %s109_s7, %s185_s1  ;;  %p191_p4 = scmp.lt.s32.totalorder %s185_s1, %s185_s1 }
  0x2c   :  { %127 = vmatpush3.bf16.msra.mxu0 %v140_v2  ;;  %p192_p5 = por %p191_p4, %p190_p3 }
  0x2e   :  { %p193_p6 = pnand %p192_p5, %p186_p2 }
  0x2f   :  { %129 = vmatmul.mubr.msk.bf16.vlgmr.msra.gmra.mrb[0].mxu0 %vm57_vm1, %v40_v4 }
 0x102   :  { %v95_v5 = vpop.f32.mrb[0].mxu0 }
 0x103   :  { %101 = vst [vmem:[#allocation7] sm:$0x3] %v95_v5  ;;  %v130_v6 = vpop.f32.mrb[1].mxu0 }
 0x104   :  { %v98_v7 = vpop.f32.mrb[2].mxu0 }
 0x105   :  { %196 = shalt.err (!%p193_p6)
}
 0x106   :  { %s197_s10 = scalar_lea.hbm %s280_s2, 32 }
 0x107   :  { %p198_p7 = scmp.ne.s32.totalorder %s280_s2, %s197_s10  ;;  %p201_p8 = scmp.lt.u32.totalorder %s197_s10, %s280_s2 }
 0x109   :  { %p203_p9 = pnand %p201_p8, %p198_p7 }
 0x10b   :  { %206 = shalt.err (!%p203_p9)
}
 0x10c   :  { %111 = dma.vmem_to_hbm [thread:$0]  %s109_s7, 32, %s280_s2, [#allocation4]   ;;  %v131_v8 = vpop.f32.mrb[3].mxu0 }
 0x10d   :  { %211 = dma.done.wait [#allocation4], 32  }
 0x10e   :  { %212 = vsyncadd [#allocation4], 4294967264 }
 0x10f   :  { %115 = vsyncpa [#allocation3], 1 }
 0x110   :  { %116 = vsyncpa [#allocation6], 1 }
 0x111   :  { %117 = vsyncpa [#allocation4], 1 }

</bundles_post_ra>
